<compile_context>
chip_gen: v7x
topology: tpu7x:2x2x1
jax: 0.10.0
libtpu: 0.0.40
codegen_flags: <defaults>
</compile_context>

<pallas_src>
import functools

import jax
import jax.numpy as jnp
from jax import lax
from jax.experimental import pallas as pl
from jax.experimental.pallas import tpu as pltpu


def _round_up(x, m):
    return (x + m - 1) // m * m


def _rnn_kernel_factory(n_layers, seq_len, batch_p, hidden_p):
    """Single-invocation kernel (everything VMEM resident, no grid).

    Inputs:
      xp       : (seq, batch_p, hidden_p)  layer-0 pre-activation x @ Wih0^T + b0 (padded)
      whh0     : (hidden_p, hidden_p)      layer-0 recurrent weight (transposed)
      per layer l in [1, n_layers):
        wih_l  : (hidden_p, hidden_p)      Wih_l^T
        whh_l  : (hidden_p, hidden_p)      Whh_l^T
        b_l    : (1, hidden_p)             b_ih + b_hh
      fc_w     : (hidden_p, out_p)
      fc_b     : (1, out_p)
    Output:
      y        : (batch_p, out_p)          fc(last layer hidden at final step)
    """
    n_in = 2 + 3 * (n_layers - 1) + 2

    def kernel(*args):
        xp_ref = args[0]
        whh0_ref = args[1]
        layer_refs = args[2:2 + 3 * (n_layers - 1)]
        fcw_ref = args[n_in - 2]
        fcb_ref = args[n_in - 1]
        out_ref = args[n_in]

        # Hoist weight loads AND bias broadcasts out of the time loop.
        whh0 = whh0_ref[...]
        wihs, whhs, biases_b = [], [], []
        for i in range(n_layers - 1):
            wihs.append(layer_refs[3 * i][...])
            whhs.append(layer_refs[3 * i + 1][...])
            biases_b.append(
                jnp.broadcast_to(layer_refs[3 * i + 2][...], (batch_p, hidden_p))
            )

        def step(t, hs):
            # hs: tuple of per-layer hidden states, each (batch_p, hidden_p).
            x_t = xp_ref[t]                      # dynamic index on leading axis
            h0 = jnp.tanh(
                x_t + jnp.dot(hs[0], whh0, preferred_element_type=jnp.float32)
            )
            new_hs = [h0]
            inp = h0
            for i in range(n_layers - 1):
                # Two independent dots summed in f32 (no lane-axis concat on the
                # recurrent critical path).
                pre = (
                    jnp.dot(inp, wihs[i], preferred_element_type=jnp.float32)
                    + jnp.dot(hs[i + 1], whhs[i], preferred_element_type=jnp.float32)
                    + biases_b[i]
                )
                hl = jnp.tanh(pre)
                new_hs.append(hl)
                inp = hl
            return tuple(new_hs)

        h_init = tuple(
            jnp.zeros((batch_p, hidden_p), jnp.float32) for _ in range(n_layers)
        )
        unroll = True if seq_len <= 64 else 4
        hs = lax.fori_loop(0, seq_len, step, h_init, unroll=unroll)

        last = hs[-1]                             # last layer, final time step
        out_ref[...] = (
            jnp.dot(last, fcw_ref[...], preferred_element_type=jnp.float32)
            + fcb_ref[...]
        )

    return kernel


@functools.partial(jax.jit, static_argnames=("n_layers",))
def rnn_forward(x_bsi, params, n_layers):
    """x_bsi: (batch, seq, input_size) float32, batch_first like nn.RNN(batch_first=True)."""
    batch, seq_len, input_size = x_bsi.shape
    hidden = params["whh_t"][0].shape[0]
    output_size = params["fc_w_t"].shape[1]

    # Lane/sublane-friendly padding.
    batch_p = _round_up(batch, 8)
    hidden_p = _round_up(hidden, 128)
    out_p = _round_up(output_size, 128)

    def pad2(a, r, c):
        return jnp.pad(a, ((0, r - a.shape[0]), (0, c - a.shape[1])))

    # Hoisted layer-0 input projection for all time steps at once; the 'sbh' output
    # layout absorbs the batch-first -> time-major transpose.  Weights padded first so
    # padded hidden lanes are exactly zero.
    wih0_p = pad2(params["wih_t"][0], input_size, hidden_p)
    b0_p = pad2(params["b"][0], 1, hidden_p)
    x_proj = (
        jnp.einsum("bsi,ih->sbh", x_bsi, wih0_p, preferred_element_type=jnp.float32)
        + b0_p
    )
    x_proj = jnp.pad(x_proj, ((0, 0), (0, batch_p - batch), (0, 0)))

    inputs = [x_proj, pad2(params["whh_t"][0], hidden_p, hidden_p)]
    for layer in range(1, n_layers):
        inputs += [
            pad2(params["wih_t"][layer], hidden_p, hidden_p),
            pad2(params["whh_t"][layer], hidden_p, hidden_p),
            pad2(params["b"][layer], 1, hidden_p),
        ]
    inputs += [pad2(params["fc_w_t"], hidden_p, out_p), pad2(params["fc_b"], 1, out_p)]

    # Explicit VMEM budget, conservative for v7x (64 MiB physical / 32 MiB scoped default).
    resident = sum(int(a.size) * a.dtype.itemsize for a in inputs) + batch_p * out_p * 4
    assert resident <= 24 * 1024 * 1024, (
        "resident set too large for the single-invocation path; "
        "use the time-chunked grid variant (see TODO at top of file)"
    )
    vmem_limit = min(128 * 1024 * 1024, max(2 * resident + (4 << 20), 16 << 20))

    kernel = _rnn_kernel_factory(n_layers, seq_len, batch_p, hidden_p)
    out_padded = pl.pallas_call(
        kernel,
        out_shape=jax.ShapeDtypeStruct((batch_p, out_p), jnp.float32),
        in_specs=[pl.BlockSpec(memory_space=pltpu.MemorySpace.VMEM)] * len(inputs),
        out_specs=pl.BlockSpec(memory_space=pltpu.MemorySpace.VMEM),
        compiler_params=pltpu.CompilerParams(vmem_limit_bytes=int(vmem_limit)),
    )(*inputs)
    return out_padded[:batch, :output_size]


def init_params(key, input_size, hidden_dim, output_size, n_layers):
    """Deterministic init mimicking PyTorch's U(-1/sqrt(hidden), 1/sqrt(hidden))."""
    k = 1.0 / jnp.sqrt(jnp.float32(hidden_dim))
    keys = jax.random.split(key, 4 * n_layers + 2)
    wih_t, whh_t, b = [], [], []
    ki = 0
    for layer in range(n_layers):
        in_feat = input_size if layer == 0 else hidden_dim
        wih = jax.random.uniform(keys[ki], (hidden_dim, in_feat), jnp.float32, -k, k); ki += 1
        whh = jax.random.uniform(keys[ki], (hidden_dim, hidden_dim), jnp.float32, -k, k); ki += 1
        b_ih = jax.random.uniform(keys[ki], (hidden_dim,), jnp.float32, -k, k); ki += 1
        b_hh = jax.random.uniform(keys[ki], (hidden_dim,), jnp.float32, -k, k); ki += 1
        wih_t.append(wih.T)                               # (in_feat, hidden)
        whh_t.append(whh.T)                               # (hidden, hidden)
        b.append((b_ih + b_hh).reshape(1, hidden_dim))    # fuse the two biases
    fc_w = jax.random.uniform(keys[ki], (output_size, hidden_dim), jnp.float32, -k, k); ki += 1
    fc_b = jax.random.uniform(keys[ki], (output_size,), jnp.float32, -k, k)
    return {
        "wih_t": wih_t,
        "whh_t": whh_t,
        "b": b,
        "fc_w_t": fc_w.T,                                 # (hidden, output)
        "fc_b": fc_b.reshape(1, output_size),
    }


def reference_forward(x_bsi, params, n_layers):
    """Pure-JAX reference of nn.RNN(tanh, batch_first) + fc on the last time step."""
    batch, seq_len, _ = x_bsi.shape
    hidden = params["whh_t"][0].shape[0]
    h = [jnp.zeros((batch, hidden), jnp.float32) for _ in range(n_layers)]
    last = None
    for t in range(seq_len):
        inp = x_bsi[:, t, :]
        for layer in range(n_layers):
            h[layer] = jnp.tanh(
                inp @ params["wih_t"][layer]
                + h[layer] @ params["whh_t"][layer]
                + params["b"][layer]
            )
            inp = h[layer]
        last = inp
    return last @ params["fc_w_t"] + params["fc_b"]


if __name__ == "__main__":
    batch, seq_len = 2, 8
    input_size, hidden_dim, output_size, n_layers = 16, 32, 4, 2

    key = jax.random.PRNGKey(0)
    kx, kp = jax.random.split(key)
    x = jax.random.normal(kx, (batch, seq_len, input_size), jnp.float32)
    params = init_params(kp, input_size, hidden_dim, output_size, n_layers)

    y = rnn_forward(x, params, n_layers)
    y = jax.block_until_ready(y)

    y_ref = reference_forward(x, params, n_layers)
    assert y.shape == (batch, output_size)
    assert jnp.allclose(y, y_ref, atol=1e-4, rtol=1e-4), "mismatch vs JAX reference"

    print("KERNEL_OK")
</pallas_src>

<mosaic_0001>
module attributes {stable_mosaic.version = 11 : i64} {
  func.func @kernel(%arg0: memref<8x8x128xf32, #tpu.memory_space<vmem>>, %arg1: memref<128x128xf32, #tpu.memory_space<vmem>>, %arg2: memref<128x128xf32, #tpu.memory_space<vmem>>, %arg3: memref<128x128xf32, #tpu.memory_space<vmem>>, %arg4: memref<1x128xf32, #tpu.memory_space<vmem>>, %arg5: memref<128x128xf32, #tpu.memory_space<vmem>>, %arg6: memref<1x128xf32, #tpu.memory_space<vmem>>, %arg7: memref<8x128xf32, #tpu.memory_space<vmem>>) attributes {dimension_semantics = [], scalar_prefetch = 0 : i64, scratch_operands = 0 : i64, tpu.core_type = #tpu.core_type<tc>} {
    %c0 = arith.constant 0 : index
    %c0_0 = arith.constant 0 : index
    %0 = vector.load %arg1[%c0, %c0_0] : memref<128x128xf32, #tpu.memory_space<vmem>>, vector<128x128xf32>
    %c0_1 = arith.constant 0 : index
    %c0_2 = arith.constant 0 : index
    %1 = vector.load %arg2[%c0_1, %c0_2] : memref<128x128xf32, #tpu.memory_space<vmem>>, vector<128x128xf32>
    %c0_3 = arith.constant 0 : index
    %c0_4 = arith.constant 0 : index
    %2 = vector.load %arg3[%c0_3, %c0_4] : memref<128x128xf32, #tpu.memory_space<vmem>>, vector<128x128xf32>
    %c0_5 = arith.constant 0 : index
    %c0_6 = arith.constant 0 : index
    %3 = vector.load %arg4[%c0_5, %c0_6] : memref<1x128xf32, #tpu.memory_space<vmem>>, vector<1x128xf32>
    %4 = vector.shape_cast %3 : vector<1x128xf32> to vector<1x128xf32>
    %5 = vector.broadcast %4 : vector<1x128xf32> to vector<8x128xf32>
    %cst = arith.constant 0.000000e+00 : f32
    %6 = vector.broadcast %cst : f32 to vector<8x128xf32>
    %cst_7 = arith.constant 0.000000e+00 : f32
    %7 = vector.broadcast %cst_7 : f32 to vector<8x128xf32>
    %c0_i32 = arith.constant 0 : i32
    %8 = arith.index_cast %c0_i32 : i32 to index
    %c0_8 = arith.constant 0 : index
    %c0_9 = arith.constant 0 : index
    %9 = vector.load %arg0[%8, %c0_8, %c0_9] : memref<8x8x128xf32, #tpu.memory_space<vmem>>, vector<1x8x128xf32>
    %10 = vector.shape_cast %9 : vector<1x8x128xf32> to vector<8x128xf32>
    %cst_10 = arith.constant dense<0.000000e+00> : vector<8x128xf32>
    %11 = tpu.matmul %6, %0, %cst_10 {dimension_numbers = #tpu.dot_dimension_numbers<[1], [0], [0], [1], [0, 0, 1, 1], [], []>} : vector<8x128xf32>, vector<128x128xf32>, vector<8x128xf32> -> vector<8x128xf32>
    %12 = arith.addf %10, %11 : vector<8x128xf32>
    %13 = math.tanh %12 : vector<8x128xf32>
    %cst_11 = arith.constant dense<0.000000e+00> : vector<8x128xf32>
    %14 = tpu.matmul %13, %1, %cst_11 {dimension_numbers = #tpu.dot_dimension_numbers<[1], [0], [0], [1], [0, 0, 1, 1], [], []>} : vector<8x128xf32>, vector<128x128xf32>, vector<8x128xf32> -> vector<8x128xf32>
    %cst_12 = arith.constant dense<0.000000e+00> : vector<8x128xf32>
    %15 = tpu.matmul %7, %2, %cst_12 {dimension_numbers = #tpu.dot_dimension_numbers<[1], [0], [0], [1], [0, 0, 1, 1], [], []>} : vector<8x128xf32>, vector<128x128xf32>, vector<8x128xf32> -> vector<8x128xf32>
    %16 = arith.addf %14, %15 : vector<8x128xf32>
    %17 = arith.addf %16, %5 : vector<8x128xf32>
    %18 = math.tanh %17 : vector<8x128xf32>
    %c1_i32 = arith.constant 1 : i32
    %19 = arith.index_cast %c1_i32 : i32 to index
    %c0_13 = arith.constant 0 : index
    %c0_14 = arith.constant 0 : index
    %20 = vector.load %arg0[%19, %c0_13, %c0_14] : memref<8x8x128xf32, #tpu.memory_space<vmem>>, vector<1x8x128xf32>
    %21 = vector.shape_cast %20 : vector<1x8x128xf32> to vector<8x128xf32>
    %cst_15 = arith.constant dense<0.000000e+00> : vector<8x128xf32>
    %22 = tpu.matmul %13, %0, %cst_15 {dimension_numbers = #tpu.dot_dimension_numbers<[1], [0], [0], [1], [0, 0, 1, 1], [], []>} : vector<8x128xf32>, vector<128x128xf32>, vector<8x128xf32> -> vector<8x128xf32>
    %23 = arith.addf %21, %22 : vector<8x128xf32>
    %24 = math.tanh %23 : vector<8x128xf32>
    %cst_16 = arith.constant dense<0.000000e+00> : vector<8x128xf32>
    %25 = tpu.matmul %24, %1, %cst_16 {dimension_numbers = #tpu.dot_dimension_numbers<[1], [0], [0], [1], [0, 0, 1, 1], [], []>} : vector<8x128xf32>, vector<128x128xf32>, vector<8x128xf32> -> vector<8x128xf32>
    %cst_17 = arith.constant dense<0.000000e+00> : vector<8x128xf32>
    %26 = tpu.matmul %18, %2, %cst_17 {dimension_numbers = #tpu.dot_dimension_numbers<[1], [0], [0], [1], [0, 0, 1, 1], [], []>} : vector<8x128xf32>, vector<128x128xf32>, vector<8x128xf32> -> vector<8x128xf32>
    %27 = arith.addf %25, %26 : vector<8x128xf32>
    %28 = arith.addf %27, %5 : vector<8x128xf32>
    %29 = math.tanh %28 : vector<8x128xf32>
    %c2_i32 = arith.constant 2 : i32
    %30 = arith.index_cast %c2_i32 : i32 to index
    %c0_18 = arith.constant 0 : index
    %c0_19 = arith.constant 0 : index
    %31 = vector.load %arg0[%30, %c0_18, %c0_19] : memref<8x8x128xf32, #tpu.memory_space<vmem>>, vector<1x8x128xf32>
    %32 = vector.shape_cast %31 : vector<1x8x128xf32> to vector<8x128xf32>
    %cst_20 = arith.constant dense<0.000000e+00> : vector<8x128xf32>
    %33 = tpu.matmul %24, %0, %cst_20 {dimension_numbers = #tpu.dot_dimension_numbers<[1], [0], [0], [1], [0, 0, 1, 1], [], []>} : vector<8x128xf32>, vector<128x128xf32>, vector<8x128xf32> -> vector<8x128xf32>
    %34 = arith.addf %32, %33 : vector<8x128xf32>
    %35 = math.tanh %34 : vector<8x128xf32>
    %cst_21 = arith.constant dense<0.000000e+00> : vector<8x128xf32>
    %36 = tpu.matmul %35, %1, %cst_21 {dimension_numbers = #tpu.dot_dimension_numbers<[1], [0], [0], [1], [0, 0, 1, 1], [], []>} : vector<8x128xf32>, vector<128x128xf32>, vector<8x128xf32> -> vector<8x128xf32>
    %cst_22 = arith.constant dense<0.000000e+00> : vector<8x128xf32>
    %37 = tpu.matmul %29, %2, %cst_22 {dimension_numbers = #tpu.dot_dimension_numbers<[1], [0], [0], [1], [0, 0, 1, 1], [], []>} : vector<8x128xf32>, vector<128x128xf32>, vector<8x128xf32> -> vector<8x128xf32>
    %38 = arith.addf %36, %37 : vector<8x128xf32>
    %39 = arith.addf %38, %5 : vector<8x128xf32>
    %40 = math.tanh %39 : vector<8x128xf32>
    %c3_i32 = arith.constant 3 : i32
    %41 = arith.index_cast %c3_i32 : i32 to index
    %c0_23 = arith.constant 0 : index
    %c0_24 = arith.constant 0 : index
    %42 = vector.load %arg0[%41, %c0_23, %c0_24] : memref<8x8x128xf32, #tpu.memory_space<vmem>>, vector<1x8x128xf32>
    %43 = vector.shape_cast %42 : vector<1x8x128xf32> to vector<8x128xf32>
    %cst_25 = arith.constant dense<0.000000e+00> : vector<8x128xf32>
    %44 = tpu.matmul %35, %0, %cst_25 {dimension_numbers = #tpu.dot_dimension_numbers<[1], [0], [0], [1], [0, 0, 1, 1], [], []>} : vector<8x128xf32>, vector<128x128xf32>, vector<8x128xf32> -> vector<8x128xf32>
    %45 = arith.addf %43, %44 : vector<8x128xf32>
    %46 = math.tanh %45 : vector<8x128xf32>
    %cst_26 = arith.constant dense<0.000000e+00> : vector<8x128xf32>
    %47 = tpu.matmul %46, %1, %cst_26 {dimension_numbers = #tpu.dot_dimension_numbers<[1], [0], [0], [1], [0, 0, 1, 1], [], []>} : vector<8x128xf32>, vector<128x128xf32>, vector<8x128xf32> -> vector<8x128xf32>
    %cst_27 = arith.constant dense<0.000000e+00> : vector<8x128xf32>
    %48 = tpu.matmul %40, %2, %cst_27 {dimension_numbers = #tpu.dot_dimension_numbers<[1], [0], [0], [1], [0, 0, 1, 1], [], []>} : vector<8x128xf32>, vector<128x128xf32>, vector<8x128xf32> -> vector<8x128xf32>
    %49 = arith.addf %47, %48 : vector<8x128xf32>
    %50 = arith.addf %49, %5 : vector<8x128xf32>
    %51 = math.tanh %50 : vector<8x128xf32>
    %c4_i32 = arith.constant 4 : i32
    %52 = arith.index_cast %c4_i32 : i32 to index
    %c0_28 = arith.constant 0 : index
    %c0_29 = arith.constant 0 : index
    %53 = vector.load %arg0[%52, %c0_28, %c0_29] : memref<8x8x128xf32, #tpu.memory_space<vmem>>, vector<1x8x128xf32>
    %54 = vector.shape_cast %53 : vector<1x8x128xf32> to vector<8x128xf32>
    %cst_30 = arith.constant dense<0.000000e+00> : vector<8x128xf32>
    %55 = tpu.matmul %46, %0, %cst_30 {dimension_numbers = #tpu.dot_dimension_numbers<[1], [0], [0], [1], [0, 0, 1, 1], [], []>} : vector<8x128xf32>, vector<128x128xf32>, vector<8x128xf32> -> vector<8x128xf32>
    %56 = arith.addf %54, %55 : vector<8x128xf32>
    %57 = math.tanh %56 : vector<8x128xf32>
    %cst_31 = arith.constant dense<0.000000e+00> : vector<8x128xf32>
    %58 = tpu.matmul %57, %1, %cst_31 {dimension_numbers = #tpu.dot_dimension_numbers<[1], [0], [0], [1], [0, 0, 1, 1], [], []>} : vector<8x128xf32>, vector<128x128xf32>, vector<8x128xf32> -> vector<8x128xf32>
    %cst_32 = arith.constant dense<0.000000e+00> : vector<8x128xf32>
    %59 = tpu.matmul %51, %2, %cst_32 {dimension_numbers = #tpu.dot_dimension_numbers<[1], [0], [0], [1], [0, 0, 1, 1], [], []>} : vector<8x128xf32>, vector<128x128xf32>, vector<8x128xf32> -> vector<8x128xf32>
    %60 = arith.addf %58, %59 : vector<8x128xf32>
    %61 = arith.addf %60, %5 : vector<8x128xf32>
    %62 = math.tanh %61 : vector<8x128xf32>
    %c5_i32 = arith.constant 5 : i32
    %63 = arith.index_cast %c5_i32 : i32 to index
    %c0_33 = arith.constant 0 : index
    %c0_34 = arith.constant 0 : index
    %64 = vector.load %arg0[%63, %c0_33, %c0_34] : memref<8x8x128xf32, #tpu.memory_space<vmem>>, vector<1x8x128xf32>
    %65 = vector.shape_cast %64 : vector<1x8x128xf32> to vector<8x128xf32>
    %cst_35 = arith.constant dense<0.000000e+00> : vector<8x128xf32>
    %66 = tpu.matmul %57, %0, %cst_35 {dimension_numbers = #tpu.dot_dimension_numbers<[1], [0], [0], [1], [0, 0, 1, 1], [], []>} : vector<8x128xf32>, vector<128x128xf32>, vector<8x128xf32> -> vector<8x128xf32>
    %67 = arith.addf %65, %66 : vector<8x128xf32>
    %68 = math.tanh %67 : vector<8x128xf32>
    %cst_36 = arith.constant dense<0.000000e+00> : vector<8x128xf32>
    %69 = tpu.matmul %68, %1, %cst_36 {dimension_numbers = #tpu.dot_dimension_numbers<[1], [0], [0], [1], [0, 0, 1, 1], [], []>} : vector<8x128xf32>, vector<128x128xf32>, vector<8x128xf32> -> vector<8x128xf32>
    %cst_37 = arith.constant dense<0.000000e+00> : vector<8x128xf32>
    %70 = tpu.matmul %62, %2, %cst_37 {dimension_numbers = #tpu.dot_dimension_numbers<[1], [0], [0], [1], [0, 0, 1, 1], [], []>} : vector<8x128xf32>, vector<128x128xf32>, vector<8x128xf32> -> vector<8x128xf32>
    %71 = arith.addf %69, %70 : vector<8x128xf32>
    %72 = arith.addf %71, %5 : vector<8x128xf32>
    %73 = math.tanh %72 : vector<8x128xf32>
    %c6_i32 = arith.constant 6 : i32
    %74 = arith.index_cast %c6_i32 : i32 to index
    %c0_38 = arith.constant 0 : index
    %c0_39 = arith.constant 0 : index
    %75 = vector.load %arg0[%74, %c0_38, %c0_39] : memref<8x8x128xf32, #tpu.memory_space<vmem>>, vector<1x8x128xf32>
    %76 = vector.shape_cast %75 : vector<1x8x128xf32> to vector<8x128xf32>
    %cst_40 = arith.constant dense<0.000000e+00> : vector<8x128xf32>
    %77 = tpu.matmul %68, %0, %cst_40 {dimension_numbers = #tpu.dot_dimension_numbers<[1], [0], [0], [1], [0, 0, 1, 1], [], []>} : vector<8x128xf32>, vector<128x128xf32>, vector<8x128xf32> -> vector<8x128xf32>
    %78 = arith.addf %76, %77 : vector<8x128xf32>
    %79 = math.tanh %78 : vector<8x128xf32>
    %cst_41 = arith.constant dense<0.000000e+00> : vector<8x128xf32>
    %80 = tpu.matmul %79, %1, %cst_41 {dimension_numbers = #tpu.dot_dimension_numbers<[1], [0], [0], [1], [0, 0, 1, 1], [], []>} : vector<8x128xf32>, vector<128x128xf32>, vector<8x128xf32> -> vector<8x128xf32>
    %cst_42 = arith.constant dense<0.000000e+00> : vector<8x128xf32>
    %81 = tpu.matmul %73, %2, %cst_42 {dimension_numbers = #tpu.dot_dimension_numbers<[1], [0], [0], [1], [0, 0, 1, 1], [], []>} : vector<8x128xf32>, vector<128x128xf32>, vector<8x128xf32> -> vector<8x128xf32>
    %82 = arith.addf %80, %81 : vector<8x128xf32>
    %83 = arith.addf %82, %5 : vector<8x128xf32>
    %84 = math.tanh %83 : vector<8x128xf32>
    %c7_i32 = arith.constant 7 : i32
    %85 = arith.index_cast %c7_i32 : i32 to index
    %c0_43 = arith.constant 0 : index
    %c0_44 = arith.constant 0 : index
    %86 = vector.load %arg0[%85, %c0_43, %c0_44] : memref<8x8x128xf32, #tpu.memory_space<vmem>>, vector<1x8x128xf32>
    %87 = vector.shape_cast %86 : vector<1x8x128xf32> to vector<8x128xf32>
    %cst_45 = arith.constant dense<0.000000e+00> : vector<8x128xf32>
    %88 = tpu.matmul %79, %0, %cst_45 {dimension_numbers = #tpu.dot_dimension_numbers<[1], [0], [0], [1], [0, 0, 1, 1], [], []>} : vector<8x128xf32>, vector<128x128xf32>, vector<8x128xf32> -> vector<8x128xf32>
    %89 = arith.addf %87, %88 : vector<8x128xf32>
    %90 = math.tanh %89 : vector<8x128xf32>
    %cst_46 = arith.constant dense<0.000000e+00> : vector<8x128xf32>
    %91 = tpu.matmul %90, %1, %cst_46 {dimension_numbers = #tpu.dot_dimension_numbers<[1], [0], [0], [1], [0, 0, 1, 1], [], []>} : vector<8x128xf32>, vector<128x128xf32>, vector<8x128xf32> -> vector<8x128xf32>
    %cst_47 = arith.constant dense<0.000000e+00> : vector<8x128xf32>
    %92 = tpu.matmul %84, %2, %cst_47 {dimension_numbers = #tpu.dot_dimension_numbers<[1], [0], [0], [1], [0, 0, 1, 1], [], []>} : vector<8x128xf32>, vector<128x128xf32>, vector<8x128xf32> -> vector<8x128xf32>
    %93 = arith.addf %91, %92 : vector<8x128xf32>
    %94 = arith.addf %93, %5 : vector<8x128xf32>
    %95 = math.tanh %94 : vector<8x128xf32>
    %c8_i32 = arith.constant 8 : i32
    %c0_48 = arith.constant 0 : index
    %c0_49 = arith.constant 0 : index
    %96 = vector.load %arg5[%c0_48, %c0_49] : memref<128x128xf32, #tpu.memory_space<vmem>>, vector<128x128xf32>
    %cst_50 = arith.constant dense<0.000000e+00> : vector<8x128xf32>
    %97 = tpu.matmul %95, %96, %cst_50 {dimension_numbers = #tpu.dot_dimension_numbers<[1], [0], [0], [1], [0, 0, 1, 1], [], []>} : vector<8x128xf32>, vector<128x128xf32>, vector<8x128xf32> -> vector<8x128xf32>
    %c0_51 = arith.constant 0 : index
    %c0_52 = arith.constant 0 : index
    %98 = vector.load %arg6[%c0_51, %c0_52] : memref<1x128xf32, #tpu.memory_space<vmem>>, vector<1x128xf32>
    %99 = vector.broadcast %98 : vector<1x128xf32> to vector<8x128xf32>
    %100 = arith.addf %97, %99 : vector<8x128xf32>
    %c0_53 = arith.constant 0 : index
    %c0_54 = arith.constant 0 : index
    %101 = vector.load %arg7[%c0_53, %c0_54] : memref<8x128xf32, #tpu.memory_space<vmem>>, vector<8x128xf32>
    tpu.vector_store %arg7[%c0_53, %c0_54], %100 {strides = array<i32>} : memref<8x128xf32, #tpu.memory_space<vmem>>, vector<8x128xf32>,
    return
  }
}

</mosaic_0001>

<bundles_post_ra>
// kernel: rnn_forward.1
= control target key start
LH: loop header
LB: loop body
LE: loop exit
PB: predicated region body
PF: predicated region fallthrough
CT: control target
= control target key end

     0   :  { %v3850_v0 = vmov 0.0|0.0   ;;  %vm3851_vm0 = vmmov 0   ;;  %v3852_v4 = vmov 0.0   ;;  %s4620_s1 = inlined_call_operand.vmem [shape: f32[128,128], index: 1, kind: input, shape index: {}]   ;;  %s4621_s3 = inlined_call_operand.vmem [shape: f32[128,128], index: 3, kind: input, shape index: {}]   ;;  %s4622_s2 = inlined_call_operand.vmem [shape: f32[128,128], index: 2, kind: input, shape index: {}]   ;;  %s4623_s0 = inlined_call_operand.vmem [shape: f32[8,8,128], index: 0, kind: input, shape index: {}]   ;;  %s4624_s4 = inlined_call_operand.vmem [shape: f32[1,128], index: 4, kind: input, shape index: {}]   ;;  %s4625_s5 = inlined_call_operand.vmem [shape: f32[128,128], index: 5, kind: input, shape index: {}]   ;;  %s4626_s6 = inlined_call_operand.vmem [shape: f32[1,128], index: 6, kind: input, shape index: {}]   ;;  %s4627_s7 = inlined_call_operand.vmem [shape: f32[8,128], index: 7, kind: output, shape index: {}]  }
   0x1   :  { %3215 = vmatprep.subr.bf16.mxu0 %v3850_v0  ;;  %v26_v1 = vld [vmem:[%s4620_s1] sm:$0xff]  ;;  %v27_v2 = vld [vmem:[%s4620_s1 + $0x8] sm:$0xff]  ;;  %v28_v3 = vld [vmem:[%s4620_s1 + $0x10] sm:$0xff]  ;;  %2372 = vmatprep.mubr.msk.f32.mxu0 %vm3851_vm0, %v3852_v4 }
   0x2   :  { %v3905_v5 = vpack.c.bf16 %v27_v2, %v26_v1  ;;  %v29_v6 = vld [vmem:[%s4620_s1 + $0x18] sm:$0xff]  ;;  %3239 = vmatprep.subr.bf16.mxu1 %v3850_v0  ;;  %2407 = vmatprep.mubr.msk.f32.mxu1 %vm3851_vm0, %v3852_v4  ;;  %v30_v8 = vld [vmem:[%s4620_s1 + $0x20] sm:$0xff]  ;;  %v31_v9 = vld [vmem:[%s4620_s1 + $0x28] sm:$0xff] }
   0x3   :  { %v3914_v7 = vpack.c.bf16 %v29_v6, %v28_v3  ;;  %v58_v10 = vld [vmem:[%s4621_s3] sm:$0xff]  ;;  %v59_v11 = vld [vmem:[%s4621_s3 + $0x8] sm:$0xff]  ;;  %v60_v13 = vld [vmem:[%s4621_s3 + $0x10] sm:$0xff]  ;;  %v3938_v15 = vpack.c.bf16 %v31_v9, %v30_v8 }
   0x4   :  { %3217 = vmatpush3.bf16.msra.mxu0 %v3905_v5  ;;  %v3929_v12 = vpack.c.bf16 %v59_v11, %v58_v10  ;;  %v61_v14 = vld [vmem:[%s4621_s3 + $0x18] sm:$0xff]  ;;  %v32_v16 = vld [vmem:[%s4620_s1 + $0x30] sm:$0xff]  ;;  %v62_v19 = vld [vmem:[%s4621_s3 + $0x20] sm:$0xff] }
   0x5   :  { %3218 = vmatprep.subr.bf16.mxu0 %v3850_v0  ;;  %v33_v17 = vld [vmem:[%s4620_s1 + $0x38] sm:$0xff]  ;;  %v3948_v18 = vpack.c.bf16 %v61_v14, %v60_v13  ;;  %v63_v20 = vld [vmem:[%s4621_s3 + $0x28] sm:$0xff]  ;;  %v34_v22 = vld [vmem:[%s4620_s1 + $0x40] sm:$0xff] }
   0x6   :  { %3241 = vmatpush3.bf16.msra.mxu1 %v3929_v12  ;;  %v3958_v21 = vpack.c.bf16 %v33_v17, %v32_v16  ;;  %v35_v23 = vld [vmem:[%s4620_s1 + $0x48] sm:$0xff]  ;;  %v3968_v24 = vpack.c.bf16 %v63_v20, %v62_v19  ;;  %v64_v25 = vld [vmem:[%s4621_s3 + $0x30] sm:$0xff]  ;;  %v65_v26 = vld [vmem:[%s4621_s3 + $0x38] sm:$0xff] }
   0x7   :  { %3242 = vmatprep.subr.bf16.mxu1 %v3850_v0  ;;  %v3978_v27 = vpack.c.bf16 %v35_v23, %v34_v22  ;;  %v36_v28 = vld [vmem:[%s4620_s1 + $0x50] sm:$0xff]  ;;  %v37_v29 = vld [vmem:[%s4620_s1 + $0x58] sm:$0xff]  ;;  %v3988_v30 = vpack.c.bf16 %v65_v26, %v64_v25  ;;  %v66_v31 = vld [vmem:[%s4621_s3 + $0x40] sm:$0xff] }
   0x8   :  { %3220 = vmatpush3.bf16.msra.mxu0 %v3914_v7  ;;  %v67_v32 = vld [vmem:[%s4621_s3 + $0x48] sm:$0xff]  ;;  %v3998_v33 = vpack.c.bf16 %v37_v29, %v36_v28  ;;  %v38_v34 = vld [vmem:[%s4620_s1 + $0x60] sm:$0xff]  ;;  %v68_v37 = vld [vmem:[%s4621_s3 + $0x50] sm:$0xff] }
   0x9   :  { %3221 = vmatprep.subr.bf16.mxu0 %v3850_v0  ;;  %v39_v35 = vld [vmem:[%s4620_s1 + $0x68] sm:$0xff]  ;;  %v4008_v36 = vpack.c.bf16 %v67_v32, %v66_v31  ;;  %v69_v38 = vld [vmem:[%s4621_s3 + $0x58] sm:$0xff]  ;;  %v40_v40 = vld [vmem:[%s4620_s1 + $0x70] sm:$0xff] }
   0xa   :  { %3244 = vmatpush3.bf16.msra.mxu1 %v3948_v18  ;;  %v4018_v39 = vpack.c.bf16 %v39_v35, %v38_v34  ;;  %v41_v41 = vld [vmem:[%s4620_s1 + $0x78] sm:$0xff]  ;;  %v4028_v42 = vpack.c.bf16 %v69_v38, %v68_v37  ;;  %v70_v43 = vld [vmem:[%s4621_s3 + $0x60] sm:$0xff]  ;;  %v71_v44 = vld [vmem:[%s4621_s3 + $0x68] sm:$0xff] }
   0xb   :  { %3245 = vmatprep.subr.bf16.mxu1 %v3850_v0  ;;  %v4038_v45 = vpack.c.bf16 %v41_v41, %v40_v40  ;;  %v4042_v46 = vpack.c.bf16 %v71_v44, %v70_v43  ;;  %v42_v47 = vld [vmem:[%s4622_s2] sm:$0xff]  ;;  %v43_v48 = vld [vmem:[%s4622_s2 + $0x8] sm:$0xff]  ;;  %v72_v49 = vld [vmem:[%s4621_s3 + $0x70] sm:$0xff] }
   0xc   :  { %3223 = vmatpush3.bf16.msra.mxu0 %v3938_v15  ;;  %v73_v50 = vld [vmem:[%s4621_s3 + $0x78] sm:$0xff]  ;;  %v4058_v51 = vpack.c.bf16 %v43_v48, %v42_v47  ;;  %v44_v53 = vld [vmem:[%s4622_s2 + $0x10] sm:$0xff]  ;;  %v46_v56 = vld [vmem:[%s4622_s2 + $0x20] sm:$0xff] }
   0xd   :  { %3224 = vmatprep.subr.bf16.mxu0 %v3850_v0  ;;  %v4061_v52 = vpack.c.bf16 %v73_v50, %v72_v49  ;;  %v45_v54 = vld [vmem:[%s4622_s2 + $0x18] sm:$0xff]  ;;  %v47_v57 = vld [vmem:[%s4622_s2 + $0x28] sm:$0xff]  ;;  %v48_v59 = vld [vmem:[%s4622_s2 + $0x30] sm:$0xff] }
   0xe   :  { %3247 = vmatpush3.bf16.msra.mxu1 %v3968_v24  ;;  %v4073_v55 = vpack.c.bf16 %v45_v54, %v44_v53  ;;  %v4088_v58 = vpack.c.bf16 %v47_v57, %v46_v56  ;;  %v49_v60 = vld [vmem:[%s4622_s2 + $0x38] sm:$0xff]  ;;  %v50_v62 = vld [vmem:[%s4622_s2 + $0x40] sm:$0xff]  ;;  %v51_v63 = vld [vmem:[%s4622_s2 + $0x48] sm:$0xff] }
   0xf   :  { %3248 = vmatprep.subr.bf16.mxu1 %v3850_v0  ;;  %v4102_v61 = vpack.c.bf16 %v49_v60, %v48_v59  ;;  %v4114_v1 = vpack.c.bf16 %v51_v63, %v50_v62  ;;  %v52_v2 = vld [vmem:[%s4622_s2 + $0x50] sm:$0xff]  ;;  %v53_v3 = vld [vmem:[%s4622_s2 + $0x58] sm:$0xff]  ;;  %v54_v8 = vld [vmem:[%s4622_s2 + $0x60] sm:$0xff] }
  0x10   :  { %3226 = vmatpush3.bf16.msra.mxu0 %v3958_v21  ;;  %v4137_v6 = vpack.c.bf16 %v53_v3, %v52_v2  ;;  %v55_v9 = vld [vmem:[%s4622_s2 + $0x68] sm:$0xff]  ;;  %v56_v11 = vld [vmem:[%s4622_s2 + $0x70] sm:$0xff]  ;;  %v57_v13 = vld [vmem:[%s4622_s2 + $0x78] sm:$0xff] }
  0x11   :  { %3227 = vmatprep.subr.bf16.mxu0 %v3850_v0  ;;  %v4147_v10 = vpack.c.bf16 %v55_v9, %v54_v8  ;;  %v4156_v14 = vpack.c.bf16 %v57_v13, %v56_v11  ;;  %v81_v16 = vld [vmem:[%s4623_s0] sm:$0xff]  ;;  %v1907_v26 = vld [vmem:[%s4623_s0 + $0x8] sm:$0xff]  ;;  %v1908_v54 = vld [vmem:[%s4623_s0 + $0x10] sm:$0xff] }
  0x12   :  { %3250 = vmatpush3.bf16.msra.mxu1 %v3988_v30  ;;  %v4206_v28 = vld [vmem:[%s4624_s4] ss:$0 sm:$0xff]  ;;  %v1909_v3 = vld [vmem:[%s4623_s0 + $0x18] sm:$0xff] }
  0x13   :  { %3251 = vmatprep.subr.bf16.mxu1 %v3850_v0 }
  0x14   :  { %3229 = vmatpush3.bf16.msra.mxu0 %v3978_v27 }
  0x15   :  { %3230 = vmatprep.subr.bf16.mxu0 %v3850_v0 }
  0x16   :  { %3253 = vmatpush3.bf16.msra.mxu1 %v4008_v36 }
  0x17   :  { %3254 = vmatprep.subr.bf16.mxu1 %v3850_v0 }
  0x18   :  { %3232 = vmatpush3.bf16.msra.mxu0 %v3998_v33 }
  0x19   :  { %3233 = vmatprep.subr.bf16.mxu0 %v3850_v0 }
  0x1a   :  { %3256 = vmatpush3.bf16.msra.mxu1 %v4028_v42 }
  0x1b   :  { %3257 = vmatprep.subr.bf16.mxu1 %v3850_v0 }
  0x1c   :  { %3235 = vmatpush3.bf16.msra.mxu0 %v4018_v39 }
  0x1d   :  { %3236 = vmatprep.subr.bf16.mxu0 %v3850_v0 }
  0x1e   :  { %3259 = vmatpush3.bf16.msra.mxu1 %v4042_v46 }
  0x1f   :  { %3260 = vmatprep.subr.bf16.mxu1 %v3850_v0 }
  0x20   :  { %3238 = vmatpush3.bf16.msra.mxu0 %v4038_v45 }
  0x21   :  { %3263 = vmatprep.subr.bf16.mxu0 %v3850_v0 }
  0x22   :  { %3262 = vmatpush3.bf16.msra.mxu1 %v4061_v52 }
  0x23   :  { %2373 = vmatmul.mubr.f32.vlgmr.msra.gmra.mrb[0].mxu0 %v3852_v4  ;;  %3287 = vmatprep.subr.bf16.mxu1 %v3850_v0 }
  0x24   :  { %3265 = vmatpush3.bf16.msra.mxu0 %v4058_v51  ;;  %2442 = vmatprep.mubr.msk.f32.mxu0 %vm3851_vm0, %v3852_v4 }
  0x25   :  { %3266 = vmatprep.subr.bf16.mxu0 %v3850_v0  ;;  %2408 = vmatmul.mubr.f32.vlgmr.msra.gmra.mrb[0].mxu1 %v3852_v4 }
  0x26   :  { %3289 = vmatpush3.bf16.msra.mxu1 %v3905_v5  ;;  %2477 = vmatprep.mubr.msk.f32.mxu1 %vm3851_vm0, %v3852_v4 }
  0x27   :  { %3290 = vmatprep.subr.bf16.mxu1 %v3850_v0 }
  0x28   :  { %3268 = vmatpush3.bf16.msra.mxu0 %v4073_v55 }
  0x29   :  { %3269 = vmatprep.subr.bf16.mxu0 %v3850_v0 }
  0x2a   :  { %3292 = vmatpush3.bf16.msra.mxu1 %v3914_v7 }
  0x2b   :  { %3293 = vmatprep.subr.bf16.mxu1 %v3850_v0 }
  0x2c   :  { %3271 = vmatpush3.bf16.msra.mxu0 %v4088_v58 }
  0x2d   :  { %3272 = vmatprep.subr.bf16.mxu0 %v3850_v0 }
  0x2e   :  { %3295 = vmatpush3.bf16.msra.mxu1 %v3938_v15 }
  0x2f   :  { %3296 = vmatprep.subr.bf16.mxu1 %v3850_v0 }
  0x30   :  { %3274 = vmatpush3.bf16.msra.mxu0 %v4102_v61 }
  0x31   :  { %3275 = vmatprep.subr.bf16.mxu0 %v3850_v0 }
  0x32   :  { %3298 = vmatpush3.bf16.msra.mxu1 %v3958_v21 }
  0x33   :  { %3299 = vmatprep.subr.bf16.mxu1 %v3850_v0 }
  0x34   :  { %3277 = vmatpush3.bf16.msra.mxu0 %v4114_v1 }
  0x35   :  { %3278 = vmatprep.subr.bf16.mxu0 %v3850_v0 }
  0x36   :  { %3301 = vmatpush3.bf16.msra.mxu1 %v3978_v27 }
  0x37   :  { %3302 = vmatprep.subr.bf16.mxu1 %v3850_v0 }
  0x38   :  { %3280 = vmatpush3.bf16.msra.mxu0 %v4137_v6 }
  0x39   :  { %3281 = vmatprep.subr.bf16.mxu0 %v3850_v0 }
  0x3a   :  { %3304 = vmatpush3.bf16.msra.mxu1 %v3998_v33 }
  0x3b   :  { %3305 = vmatprep.subr.bf16.mxu1 %v3850_v0 }
  0x3c   :  { %3283 = vmatpush3.bf16.msra.mxu0 %v4147_v10 }
  0x3d   :  { %3284 = vmatprep.subr.bf16.mxu0 %v3850_v0 }
  0x3e   :  { %3307 = vmatpush3.bf16.msra.mxu1 %v4018_v39 }
  0x3f   :  { %3308 = vmatprep.subr.bf16.mxu1 %v3850_v0 }
  0x40   :  { %3286 = vmatpush3.bf16.msra.mxu0 %v4156_v14 }
  0x41   :  { %3311 = vmatprep.subr.bf16.mxu0 %v3850_v0 }
  0x42   :  { %3310 = vmatpush3.bf16.msra.mxu1 %v4038_v45 }
  0x43   :  { %3335 = vmatprep.subr.bf16.mxu1 %v3850_v0 }
  0xf6   :  { %v148_v17 = vpop.f32.mrb[0].mxu0 }
  0xf7   :  { %v152_v19 = vadd.f32 %v148_v17, %v81_v16  ;;  %v2374_v20 = vpop.f32.mrb[1].mxu0 }
  0xf8   :  { %v220_v22 = vpop.f32.mrb[0].mxu1 }
  0xf9   :  { %3818 = vtanh.f32 %v152_v19  ;;  %v2409_v23 = vpop.f32.mrb[1].mxu1 }
 0x103   :  { %v3819_v25 = vpop.eup %3818 }
 0x104   :  { %2443 = vmatmul.mubr.f32.vlgmr.msra.gmra.mrb[2].mxu0 %v3819_v25  ;;  %2478 = vmatmul.mubr.f32.vlgmr.msra.gmra.mrb[2].mxu1 %v3819_v25 }
 0x105   :  { %3337 = vmatpush3.bf16.msra.mxu1 %v4058_v51  ;;  %3313 = vmatpush3.bf16.msra.mxu0 %v3929_v12 }
 0x106   :  { %3338 = vmatprep.subr.bf16.mxu1 %v3850_v0  ;;  %3314 = vmatprep.subr.bf16.mxu0 %v3850_v0 }
 0x107   :  { %2547 = vmatprep.mubr.msk.f32.mxu1 %vm3851_vm0, %v3852_v4  ;;  %2512 = vmatprep.mubr.msk.f32.mxu0 %vm3851_vm0, %v3852_v4 }
 0x109   :  { %3340 = vmatpush3.bf16.msra.mxu1 %v4073_v55  ;;  %3316 = vmatpush3.bf16.msra.mxu0 %v3948_v18 }
 0x10a   :  { %3341 = vmatprep.subr.bf16.mxu1 %v3850_v0  ;;  %3317 = vmatprep.subr.bf16.mxu0 %v3850_v0 }
 0x10d   :  { %3343 = vmatpush3.bf16.msra.mxu1 %v4088_v58  ;;  %3319 = vmatpush3.bf16.msra.mxu0 %v3968_v24 }
 0x10e   :  { %3344 = vmatprep.subr.bf16.mxu1 %v3850_v0  ;;  %3320 = vmatprep.subr.bf16.mxu0 %v3850_v0 }
 0x111   :  { %3346 = vmatpush3.bf16.msra.mxu1 %v4102_v61  ;;  %3322 = vmatpush3.bf16.msra.mxu0 %v3988_v30 }
 0x112   :  { %3347 = vmatprep.subr.bf16.mxu1 %v3850_v0  ;;  %3323 = vmatprep.subr.bf16.mxu0 %v3850_v0 }
 0x115   :  { %3349 = vmatpush3.bf16.msra.mxu1 %v4114_v1  ;;  %3325 = vmatpush3.bf16.msra.mxu0 %v4008_v36 }
 0x116   :  { %3350 = vmatprep.subr.bf16.mxu1 %v3850_v0  ;;  %3326 = vmatprep.subr.bf16.mxu0 %v3850_v0 }
 0x119   :  { %3352 = vmatpush3.bf16.msra.mxu1 %v4137_v6  ;;  %3328 = vmatpush3.bf16.msra.mxu0 %v4028_v42 }
 0x11a   :  { %3353 = vmatprep.subr.bf16.mxu1 %v3850_v0  ;;  %3329 = vmatprep.subr.bf16.mxu0 %v3850_v0 }
 0x11d   :  { %3355 = vmatpush3.bf16.msra.mxu1 %v4147_v10  ;;  %3331 = vmatpush3.bf16.msra.mxu0 %v4042_v46 }
 0x11e   :  { %3356 = vmatprep.subr.bf16.mxu1 %v3850_v0  ;;  %3332 = vmatprep.subr.bf16.mxu0 %v3850_v0 }
 0x121   :  { %3358 = vmatpush3.bf16.msra.mxu1 %v4156_v14  ;;  %3334 = vmatpush3.bf16.msra.mxu0 %v4061_v52 }
 0x122   :  { %3359 = vmatprep.subr.bf16.mxu0 %v3850_v0  ;;  %3383 = vmatprep.subr.bf16.mxu1 %v3850_v0 }
 0x1d7   :  { %v290_v29 = vpop.f32.mrb[2].mxu0  ;;  %v364_v31 = vpop.f32.mrb[2].mxu1 }
 0x1d8   :  { %v291_v32 = vadd.f32 %v290_v29, %v220_v22  ;;  %v368_v34 = vadd.f32 %v1907_v26, %v364_v31  ;;  %v2444_v35 = vpop.f32.mrb[3].mxu0  ;;  %v2479_v37 = vpop.f32.mrb[3].mxu1 }
 0x1da   :  { %v294_v38 = vadd.f32 %v4206_v28, %v291_v32  ;;  %3820 = vtanh.f32 %v368_v34  ;;  %v1910_v34 = vld [vmem:[%s4623_s0 + $0x20] sm:$0xff] }
 0x1dc   :  { %3822 = vtanh.f32 %v294_v38 }
 0x1e4   :  { %v3821_v40 = vpop.eup %3820 }
 0x1e5   :  { %2548 = vmatmul.mubr.f32.vlgmr.msra.gmra.mrb[4].mxu1 %v3821_v40 }
 0x1e6   :  { %v3823_v41 = vpop.eup %3822  ;;  %3385 = vmatpush3.bf16.msra.mxu1 %v3929_v12  ;;  %2617 = vmatprep.mubr.msk.f32.mxu1 %vm3851_vm0, %v3852_v4 }
 0x1e7   :  { %2513 = vmatmul.mubr.f32.vlgmr.msra.gmra.mrb[4].mxu0 %v3823_v41  ;;  %3386 = vmatprep.subr.bf16.mxu1 %v3850_v0 }
 0x1e8   :  { %3361 = vmatpush3.bf16.msra.mxu0 %v3905_v5  ;;  %2582 = vmatprep.mubr.msk.f32.mxu0 %vm3851_vm0, %v3852_v4 }
 0x1e9   :  { %3362 = vmatprep.subr.bf16.mxu0 %v3850_v0 }
 0x1ea   :  { %3388 = vmatpush3.bf16.msra.mxu1 %v3948_v18 }
 0x1eb   :  { %3389 = vmatprep.subr.bf16.mxu1 %v3850_v0 }
 0x1ec   :  { %3364 = vmatpush3.bf16.msra.mxu0 %v3914_v7 }
 0x1ed   :  { %3365 = vmatprep.subr.bf16.mxu0 %v3850_v0 }
 0x1ee   :  { %3391 = vmatpush3.bf16.msra.mxu1 %v3968_v24 }
 0x1ef   :  { %3392 = vmatprep.subr.bf16.mxu1 %v3850_v0 }
 0x1f0   :  { %3367 = vmatpush3.bf16.msra.mxu0 %v3938_v15 }
 0x1f1   :  { %3368 = vmatprep.subr.bf16.mxu0 %v3850_v0 }
 0x1f2   :  { %3394 = vmatpush3.bf16.msra.mxu1 %v3988_v30 }
 0x1f3   :  { %3395 = vmatprep.subr.bf16.mxu1 %v3850_v0 }
 0x1f4   :  { %3370 = vmatpush3.bf16.msra.mxu0 %v3958_v21 }
 0x1f5   :  { %3371 = vmatprep.subr.bf16.mxu0 %v3850_v0 }
 0x1f6   :  { %3397 = vmatpush3.bf16.msra.mxu1 %v4008_v36 }
 0x1f7   :  { %3398 = vmatprep.subr.bf16.mxu1 %v3850_v0 }
 0x1f8   :  { %3373 = vmatpush3.bf16.msra.mxu0 %v3978_v27 }
 0x1f9   :  { %3374 = vmatprep.subr.bf16.mxu0 %v3850_v0 }
 0x1fa   :  { %3400 = vmatpush3.bf16.msra.mxu1 %v4028_v42 }
 0x1fb   :  { %3401 = vmatprep.subr.bf16.mxu1 %v3850_v0 }
 0x1fc   :  { %3376 = vmatpush3.bf16.msra.mxu0 %v3998_v33 }
 0x1fd   :  { %3377 = vmatprep.subr.bf16.mxu0 %v3850_v0 }
 0x1fe   :  { %3403 = vmatpush3.bf16.msra.mxu1 %v4042_v46 }
 0x1ff   :  { %3404 = vmatprep.subr.bf16.mxu1 %v3850_v0 }
 0x200   :  { %3379 = vmatpush3.bf16.msra.mxu0 %v4018_v39 }
 0x201   :  { %3380 = vmatprep.subr.bf16.mxu0 %v3850_v0 }
 0x202   :  { %3406 = vmatpush3.bf16.msra.mxu1 %v4061_v52 }
 0x203   :  { %3431 = vmatprep.subr.bf16.mxu1 %v3850_v0 }
 0x204   :  { %3382 = vmatpush3.bf16.msra.mxu0 %v4038_v45 }
 0x205   :  { %3407 = vmatprep.subr.bf16.mxu0 %v3850_v0 }
 0x207   :  { %2583 = vmatmul.mubr.f32.vlgmr.msra.gmra.mrb[6].mxu0 %v3821_v40 }
 0x208   :  { %3409 = vmatpush3.bf16.msra.mxu0 %v4058_v51  ;;  %2652 = vmatprep.mubr.msk.f32.mxu0 %vm3851_vm0, %v3852_v4 }
 0x209   :  { %3410 = vmatprep.subr.bf16.mxu0 %v3850_v0 }
 0x20c   :  { %3412 = vmatpush3.bf16.msra.mxu0 %v4073_v55 }
 0x20d   :  { %3413 = vmatprep.subr.bf16.mxu0 %v3850_v0 }
 0x210   :  { %3415 = vmatpush3.bf16.msra.mxu0 %v4088_v58 }
 0x211   :  { %3416 = vmatprep.subr.bf16.mxu0 %v3850_v0 }
 0x214   :  { %3418 = vmatpush3.bf16.msra.mxu0 %v4102_v61 }
 0x215   :  { %3419 = vmatprep.subr.bf16.mxu0 %v3850_v0 }
 0x218   :  { %3421 = vmatpush3.bf16.msra.mxu0 %v4114_v1 }
 0x219   :  { %3422 = vmatprep.subr.bf16.mxu0 %v3850_v0 }
 0x21c   :  { %3424 = vmatpush3.bf16.msra.mxu0 %v4137_v6 }
 0x21d   :  { %3425 = vmatprep.subr.bf16.mxu0 %v3850_v0 }
 0x220   :  { %3427 = vmatpush3.bf16.msra.mxu0 %v4147_v10 }
 0x221   :  { %3428 = vmatprep.subr.bf16.mxu0 %v3850_v0 }
 0x224   :  { %3430 = vmatpush3.bf16.msra.mxu0 %v4156_v14 }
 0x225   :  { %3455 = vmatprep.subr.bf16.mxu0 %v3850_v0 }
 0x2b8   :  { %v506_v43 = vpop.f32.mrb[4].mxu1 }
 0x2b9   :  { %v2549_v44 = vpop.f32.mrb[5].mxu1 }
 0x2ba   :  { %v436_v47 = vpop.f32.mrb[4].mxu0 }
 0x2bb   :  { %v507_v48 = vadd.f32 %v506_v43, %v436_v47  ;;  %v2514_v49 = vpop.f32.mrb[5].mxu0 }
 0x2bc   :  { %v1911_v49 = vld [vmem:[%s4623_s0 + $0x28] sm:$0xff] }
 0x2bd   :  { %v510_v50 = vadd.f32 %v4206_v28, %v507_v48 }
 0x2bf   :  { %3824 = vtanh.f32 %v510_v50 }
 0x2c9   :  { %v3825_v53 = vpop.eup %3824 }
 0x2ca   :  { %2618 = vmatmul.mubr.f32.vlgmr.msra.gmra.mrb[6].mxu1 %v3825_v53 }
 0x2cb   :  { %3433 = vmatpush3.bf16.msra.mxu1 %v3905_v5  ;;  %2687 = vmatprep.mubr.msk.f32.mxu1 %vm3851_vm0, %v3852_v4 }
 0x2cc   :  { %3434 = vmatprep.subr.bf16.mxu1 %v3850_v0 }
 0x2cf   :  { %3436 = vmatpush3.bf16.msra.mxu1 %v3914_v7 }
 0x2d0   :  { %3437 = vmatprep.subr.bf16.mxu1 %v3850_v0 }
 0x2d3   :  { %3439 = vmatpush3.bf16.msra.mxu1 %v3938_v15 }
 0x2d4   :  { %3440 = vmatprep.subr.bf16.mxu1 %v3850_v0 }
 0x2d7   :  { %3442 = vmatpush3.bf16.msra.mxu1 %v3958_v21 }
 0x2d8   :  { %3443 = vmatprep.subr.bf16.mxu1 %v3850_v0 }
 0x2da   :  { %v580_v56 = vpop.f32.mrb[6].mxu0 }
 0x2db   :  { %v584_v57 = vadd.f32 %v1908_v54, %v580_v56  ;;  %v2584_v59 = vpop.f32.mrb[7].mxu0  ;;  %3445 = vmatpush3.bf16.msra.mxu1 %v3978_v27 }
 0x2dc   :  { %3446 = vmatprep.subr.bf16.mxu1 %v3850_v0 }
 0x2dd   :  { %3826 = vtanh.f32 %v584_v57 }
 0x2df   :  { %3448 = vmatpush3.bf16.msra.mxu1 %v3998_v33 }
 0x2e0   :  { %3449 = vmatprep.subr.bf16.mxu1 %v3850_v0 }
 0x2e3   :  { %3451 = vmatpush3.bf16.msra.mxu1 %v4018_v39 }
 0x2e4   :  { %3452 = vmatprep.subr.bf16.mxu1 %v3850_v0 }
 0x2e7   :  { %v3827_v60 = vpop.eup %3826  ;;  %3454 = vmatpush3.bf16.msra.mxu1 %v4038_v45 }
 0x2e8   :  { %2653 = vmatmul.mubr.f32.vlgmr.msra.gmra.mrb[8].mxu0 %v3827_v60  ;;  %3479 = vmatprep.subr.bf16.mxu1 %v3850_v0 }
 0x2e9   :  { %3457 = vmatpush3.bf16.msra.mxu0 %v3929_v12  ;;  %2722 = vmatprep.mubr.msk.f32.mxu0 %vm3851_vm0, %v3852_v4 }
 0x2ea   :  { %2688 = vmatmul.mubr.f32.vlgmr.msra.gmra.mrb[8].mxu1 %v3827_v60  ;;  %3458 = vmatprep.subr.bf16.mxu0 %v3850_v0 }
 0x2eb   :  { %3481 = vmatpush3.bf16.msra.mxu1 %v4058_v51  ;;  %2757 = vmatprep.mubr.msk.f32.mxu1 %vm3851_vm0, %v3852_v4 }
 0x2ec   :  { %3482 = vmatprep.subr.bf16.mxu1 %v3850_v0 }
 0x2ed   :  { %3460 = vmatpush3.bf16.msra.mxu0 %v3948_v18 }
 0x2ee   :  { %3461 = vmatprep.subr.bf16.mxu0 %v3850_v0 }
 0x2ef   :  { %3484 = vmatpush3.bf16.msra.mxu1 %v4073_v55 }
 0x2f0   :  { %3485 = vmatprep.subr.bf16.mxu1 %v3850_v0 }
 0x2f1   :  { %3463 = vmatpush3.bf16.msra.mxu0 %v3968_v24 }
 0x2f2   :  { %3464 = vmatprep.subr.bf16.mxu0 %v3850_v0 }
 0x2f3   :  { %3487 = vmatpush3.bf16.msra.mxu1 %v4088_v58 }
 0x2f4   :  { %3488 = vmatprep.subr.bf16.mxu1 %v3850_v0 }
 0x2f5   :  { %3466 = vmatpush3.bf16.msra.mxu0 %v3988_v30 }
 0x2f6   :  { %3467 = vmatprep.subr.bf16.mxu0 %v3850_v0 }
 0x2f7   :  { %3490 = vmatpush3.bf16.msra.mxu1 %v4102_v61 }
 0x2f8   :  { %3491 = vmatprep.subr.bf16.mxu1 %v3850_v0 }
 0x2f9   :  { %3469 = vmatpush3.bf16.msra.mxu0 %v4008_v36 }
 0x2fa   :  { %3470 = vmatprep.subr.bf16.mxu0 %v3850_v0 }
 0x2fb   :  { %3493 = vmatpush3.bf16.msra.mxu1 %v4114_v1 }
 0x2fc   :  { %3494 = vmatprep.subr.bf16.mxu1 %v3850_v0 }
 0x2fd   :  { %3472 = vmatpush3.bf16.msra.mxu0 %v4028_v42 }
 0x2fe   :  { %3473 = vmatprep.subr.bf16.mxu0 %v3850_v0 }
 0x2ff   :  { %3496 = vmatpush3.bf16.msra.mxu1 %v4137_v6 }
 0x300   :  { %3497 = vmatprep.subr.bf16.mxu1 %v3850_v0 }
 0x301   :  { %3475 = vmatpush3.bf16.msra.mxu0 %v4042_v46 }
 0x302   :  { %3476 = vmatprep.subr.bf16.mxu0 %v3850_v0 }
 0x303   :  { %3499 = vmatpush3.bf16.msra.mxu1 %v4147_v10 }
 0x304   :  { %3500 = vmatprep.subr.bf16.mxu1 %v3850_v0 }
 0x305   :  { %3478 = vmatpush3.bf16.msra.mxu0 %v4061_v52 }
 0x306   :  { %3503 = vmatprep.subr.bf16.mxu0 %v3850_v0 }
 0x307   :  { %3502 = vmatpush3.bf16.msra.mxu1 %v4156_v14 }
 0x308   :  { %3527 = vmatprep.subr.bf16.mxu1 %v3850_v0 }
 0x39d   :  { %v652_v62 = vpop.f32.mrb[6].mxu1 }
 0x39e   :  { %v2619_v63 = vpop.f32.mrb[7].mxu1 }
 0x3bb   :  { %v722_v2 = vpop.f32.mrb[8].mxu0 }
 0x3bc   :  { %v723_v8 = vadd.f32 %v722_v2, %v652_v62  ;;  %v2654_v9 = vpop.f32.mrb[9].mxu0 }
 0x3bd   :  { %v796_v11 = vpop.f32.mrb[8].mxu1 }
 0x3be   :  { %v726_v13 = vadd.f32 %v4206_v28, %v723_v8  ;;  %v800_v16 = vadd.f32 %v1909_v3, %v796_v11  ;;  %v2689_v17 = vpop.f32.mrb[9].mxu1  ;;  %v1912_v11 = vld [vmem:[%s4623_s0 + $0x30] sm:$0xff] }
 0x3bf   :  { %v1815_v17 = vld [vmem:[%s4625_s5 + $0x38] sm:$0xff] }
 0x3c0   :  { %3828 = vtanh.f32 %v726_v13 }
 0x3c1   :  { %3830 = vtanh.f32 %v800_v16 }
 0x3ca   :  { %v3829_v19 = vpop.eup %3828 }
 0x3cb   :  { %v3831_v20 = vpop.eup %3830  ;;  %2723 = vmatmul.mubr.f32.vlgmr.msra.gmra.mrb[10].mxu0 %v3829_v19 }
 0x3cc   :  { %2758 = vmatmul.mubr.f32.vlgmr.msra.gmra.mrb[10].mxu1 %v3831_v20  ;;  %3505 = vmatpush3.bf16.msra.mxu0 %v3905_v5 }
 0x3cd   :  { %3506 = vmatprep.subr.bf16.mxu0 %v3850_v0  ;;  %2792 = vmatprep.mubr.msk.f32.mxu0 %vm3851_vm0, %v3852_v4 }
 0x3ce   :  { %3529 = vmatpush3.bf16.msra.mxu1 %v3929_v12  ;;  %2827 = vmatprep.mubr.msk.f32.mxu1 %vm3851_vm0, %v3852_v4 }
 0x3cf   :  { %3530 = vmatprep.subr.bf16.mxu1 %v3850_v0 }
 0x3d0   :  { %3508 = vmatpush3.bf16.msra.mxu0 %v3914_v7 }
 0x3d1   :  { %3509 = vmatprep.subr.bf16.mxu0 %v3850_v0 }
 0x3d2   :  { %3532 = vmatpush3.bf16.msra.mxu1 %v3948_v18 }
 0x3d3   :  { %3533 = vmatprep.subr.bf16.mxu1 %v3850_v0 }
 0x3d4   :  { %3511 = vmatpush3.bf16.msra.mxu0 %v3938_v15 }
 0x3d5   :  { %3512 = vmatprep.subr.bf16.mxu0 %v3850_v0 }
 0x3d6   :  { %3535 = vmatpush3.bf16.msra.mxu1 %v3968_v24 }
 0x3d7   :  { %3536 = vmatprep.subr.bf16.mxu1 %v3850_v0 }
 0x3d8   :  { %3514 = vmatpush3.bf16.msra.mxu0 %v3958_v21 }
 0x3d9   :  { %3515 = vmatprep.subr.bf16.mxu0 %v3850_v0 }
 0x3da   :  { %3538 = vmatpush3.bf16.msra.mxu1 %v3988_v30 }
 0x3db   :  { %3539 = vmatprep.subr.bf16.mxu1 %v3850_v0 }
 0x3dc   :  { %3517 = vmatpush3.bf16.msra.mxu0 %v3978_v27 }
 0x3dd   :  { %3518 = vmatprep.subr.bf16.mxu0 %v3850_v0 }
 0x3de   :  { %3541 = vmatpush3.bf16.msra.mxu1 %v4008_v36 }
 0x3df   :  { %3542 = vmatprep.subr.bf16.mxu1 %v3850_v0 }
 0x3e0   :  { %3520 = vmatpush3.bf16.msra.mxu0 %v3998_v33 }
 0x3e1   :  { %3521 = vmatprep.subr.bf16.mxu0 %v3850_v0 }
 0x3e2   :  { %3544 = vmatpush3.bf16.msra.mxu1 %v4028_v42 }
 0x3e3   :  { %3545 = vmatprep.subr.bf16.mxu1 %v3850_v0 }
 0x3e4   :  { %3523 = vmatpush3.bf16.msra.mxu0 %v4018_v39 }
 0x3e5   :  { %3524 = vmatprep.subr.bf16.mxu0 %v3850_v0 }
 0x3e6   :  { %3547 = vmatpush3.bf16.msra.mxu1 %v4042_v46 }
 0x3e7   :  { %3548 = vmatprep.subr.bf16.mxu1 %v3850_v0 }
 0x3e8   :  { %3526 = vmatpush3.bf16.msra.mxu0 %v4038_v45 }
 0x3e9   :  { %3551 = vmatprep.subr.bf16.mxu0 %v3850_v0 }
 0x3ea   :  { %3550 = vmatpush3.bf16.msra.mxu1 %v4061_v52 }
 0x3eb   :  { %2793 = vmatmul.mubr.f32.vlgmr.msra.gmra.mrb[12].mxu0 %v3831_v20  ;;  %3575 = vmatprep.subr.bf16.mxu1 %v3850_v0  ;;  %v1817_v20 = vld [vmem:[%s4625_s5 + $0x48] sm:$0xff] }
 0x3ec   :  { %3553 = vmatpush3.bf16.msra.mxu0 %v4058_v51  ;;  %2862 = vmatprep.mubr.msk.f32.mxu0 %vm3851_vm0, %v3852_v4 }
 0x3ed   :  { %3554 = vmatprep.subr.bf16.mxu0 %v3850_v0 }
 0x3f0   :  { %3556 = vmatpush3.bf16.msra.mxu0 %v4073_v55 }
 0x3f1   :  { %3557 = vmatprep.subr.bf16.mxu0 %v3850_v0 }
 0x3f4   :  { %3559 = vmatpush3.bf16.msra.mxu0 %v4088_v58 }
 0x3f5   :  { %3560 = vmatprep.subr.bf16.mxu0 %v3850_v0 }
 0x3f8   :  { %3562 = vmatpush3.bf16.msra.mxu0 %v4102_v61 }
 0x3f9   :  { %3563 = vmatprep.subr.bf16.mxu0 %v3850_v0 }
 0x3fc   :  { %3565 = vmatpush3.bf16.msra.mxu0 %v4114_v1 }
 0x3fd   :  { %3566 = vmatprep.subr.bf16.mxu0 %v3850_v0 }
 0x400   :  { %3568 = vmatpush3.bf16.msra.mxu0 %v4137_v6 }
 0x401   :  { %3569 = vmatprep.subr.bf16.mxu0 %v3850_v0 }
 0x404   :  { %3571 = vmatpush3.bf16.msra.mxu0 %v4147_v10 }
 0x405   :  { %3572 = vmatprep.subr.bf16.mxu0 %v3850_v0 }
 0x408   :  { %3574 = vmatpush3.bf16.msra.mxu0 %v4156_v14 }
 0x409   :  { %3599 = vmatprep.subr.bf16.mxu0 %v3850_v0 }
 0x49e   :  { %v868_v22 = vpop.f32.mrb[10].mxu0 }
 0x49f   :  { %v938_v23 = vpop.f32.mrb[10].mxu1  ;;  %v2724_v25 = vpop.f32.mrb[11].mxu0 }
 0x4a0   :  { %v939_v26 = vadd.f32 %v938_v23, %v868_v22  ;;  %v2759_v29 = vpop.f32.mrb[11].mxu1  ;;  %v1818_v23 = vld [vmem:[%s4625_s5 + $0x50] sm:$0xff]  ;;  %v1819_v25 = vld [vmem:[%s4625_s5 + $0x58] sm:$0xff] }
 0x4a1   :  { %v1820_v29 = vld [vmem:[%s4625_s5 + $0x60] sm:$0xff] }
 0x4a2   :  { %v942_v31 = vadd.f32 %v4206_v28, %v939_v26  ;;  %v3807_v26 = vpack.c.bf16 %v1819_v25, %v1818_v23 }
 0x4a4   :  { %3832 = vtanh.f32 %v942_v31  ;;  %v1821_v31 = vld [vmem:[%s4625_s5 + $0x68] sm:$0xff] }
 0x4ae   :  { %v3833_v32 = vpop.eup %3832 }
 0x4af   :  { %2828 = vmatmul.mubr.f32.vlgmr.msra.gmra.mrb[12].mxu1 %v3833_v32  ;;  %v3810_v32 = vpack.c.bf16 %v1821_v31, %v1820_v29 }
 0x4b0   :  { %3577 = vmatpush3.bf16.msra.mxu1 %v3905_v5  ;;  %2897 = vmatprep.mubr.msk.f32.mxu1 %vm3851_vm0, %v3852_v4 }
 0x4b1   :  { %3578 = vmatprep.subr.bf16.mxu1 %v3850_v0 }
 0x4b4   :  { %3580 = vmatpush3.bf16.msra.mxu1 %v3914_v7 }
 0x4b5   :  { %3581 = vmatprep.subr.bf16.mxu1 %v3850_v0 }
 0x4b8   :  { %3583 = vmatpush3.bf16.msra.mxu1 %v3938_v15 }
 0x4b9   :  { %3584 = vmatprep.subr.bf16.mxu1 %v3850_v0 }
 0x4bc   :  { %3586 = vmatpush3.bf16.msra.mxu1 %v3958_v21 }
 0x4bd   :  { %3587 = vmatprep.subr.bf16.mxu1 %v3850_v0 }
 0x4be   :  { %v1012_v35 = vpop.f32.mrb[12].mxu0 }
 0x4bf   :  { %v1016_v37 = vadd.f32 %v1910_v34, %v1012_v35  ;;  %v2794_v38 = vpop.f32.mrb[13].mxu0  ;;  %v1822_v34 = vld [vmem:[%s4625_s5 + $0x70] sm:$0xff]  ;;  %v1823_v35 = vld [vmem:[%s4625_s5 + $0x78] sm:$0xff] }
 0x4c0   :  { %3589 = vmatpush3.bf16.msra.mxu1 %v3978_v27 }
 0x4c1   :  { %3834 = vtanh.f32 %v1016_v37  ;;  %3590 = vmatprep.subr.bf16.mxu1 %v3850_v0  ;;  %v3813_v37 = vpack.c.bf16 %v1823_v35, %v1822_v34 }
 0x4c4   :  { %3592 = vmatpush3.bf16.msra.mxu1 %v3998_v33 }
 0x4c5   :  { %3593 = vmatprep.subr.bf16.mxu1 %v3850_v0 }
 0x4c8   :  { %3595 = vmatpush3.bf16.msra.mxu1 %v4018_v39 }
 0x4c9   :  { %3596 = vmatprep.subr.bf16.mxu1 %v3850_v0 }
 0x4cb   :  { %v3835_v40 = vpop.eup %3834 }
 0x4cc   :  { %3598 = vmatpush3.bf16.msra.mxu1 %v4038_v45  ;;  %2863 = vmatmul.mubr.f32.vlgmr.msra.gmra.mrb[14].mxu0 %v3835_v40 }
 0x4cd   :  { %3601 = vmatpush3.bf16.msra.mxu0 %v3929_v12  ;;  %3623 = vmatprep.subr.bf16.mxu1 %v3850_v0 }
 0x4ce   :  { %3602 = vmatprep.subr.bf16.mxu0 %v3850_v0  ;;  %2932 = vmatprep.mubr.msk.f32.mxu0 %vm3851_vm0, %v3852_v4 }
 0x4cf   :  { %2898 = vmatmul.mubr.f32.vlgmr.msra.gmra.mrb[14].mxu1 %v3835_v40 }
 0x4d0   :  { %3625 = vmatpush3.bf16.msra.mxu1 %v4058_v51  ;;  %2967 = vmatprep.mubr.msk.f32.mxu1 %vm3851_vm0, %v3852_v4 }
 0x4d1   :  { %3604 = vmatpush3.bf16.msra.mxu0 %v3948_v18  ;;  %3626 = vmatprep.subr.bf16.mxu1 %v3850_v0 }
 0x4d2   :  { %3605 = vmatprep.subr.bf16.mxu0 %v3850_v0 }
 0x4d4   :  { %3628 = vmatpush3.bf16.msra.mxu1 %v4073_v55 }
 0x4d5   :  { %3607 = vmatpush3.bf16.msra.mxu0 %v3968_v24  ;;  %3629 = vmatprep.subr.bf16.mxu1 %v3850_v0 }
 0x4d6   :  { %3608 = vmatprep.subr.bf16.mxu0 %v3850_v0 }
 0x4d8   :  { %3631 = vmatpush3.bf16.msra.mxu1 %v4088_v58 }
 0x4d9   :  { %3610 = vmatpush3.bf16.msra.mxu0 %v3988_v30  ;;  %3632 = vmatprep.subr.bf16.mxu1 %v3850_v0 }
 0x4da   :  { %3611 = vmatprep.subr.bf16.mxu0 %v3850_v0 }
 0x4dc   :  { %3634 = vmatpush3.bf16.msra.mxu1 %v4102_v61 }
 0x4dd   :  { %3613 = vmatpush3.bf16.msra.mxu0 %v4008_v36  ;;  %3635 = vmatprep.subr.bf16.mxu1 %v3850_v0 }
 0x4de   :  { %3614 = vmatprep.subr.bf16.mxu0 %v3850_v0 }
 0x4e0   :  { %3637 = vmatpush3.bf16.msra.mxu1 %v4114_v1 }
 0x4e1   :  { %3616 = vmatpush3.bf16.msra.mxu0 %v4028_v42  ;;  %3638 = vmatprep.subr.bf16.mxu1 %v3850_v0 }
 0x4e2   :  { %3617 = vmatprep.subr.bf16.mxu0 %v3850_v0 }
 0x4e4   :  { %3640 = vmatpush3.bf16.msra.mxu1 %v4137_v6 }
 0x4e5   :  { %3619 = vmatpush3.bf16.msra.mxu0 %v4042_v46  ;;  %3641 = vmatprep.subr.bf16.mxu1 %v3850_v0 }
 0x4e6   :  { %3620 = vmatprep.subr.bf16.mxu0 %v3850_v0 }
 0x4e8   :  { %3643 = vmatpush3.bf16.msra.mxu1 %v4147_v10 }
 0x4e9   :  { %3622 = vmatpush3.bf16.msra.mxu0 %v4061_v52  ;;  %3644 = vmatprep.subr.bf16.mxu1 %v3850_v0 }
 0x4ea   :  { %3647 = vmatprep.subr.bf16.mxu0 %v3850_v0 }
 0x4ec   :  { %3646 = vmatpush3.bf16.msra.mxu1 %v4156_v14 }
 0x4ed   :  { %3671 = vmatprep.subr.bf16.mxu1 %v3850_v0 }
 0x582   :  { %v1084_v41 = vpop.f32.mrb[12].mxu1 }
 0x583   :  { %v2829_v43 = vpop.f32.mrb[13].mxu1 }
 0x59f   :  { %v1154_v44 = vpop.f32.mrb[14].mxu0 }
 0x5a0   :  { %v1155_v47 = vadd.f32 %v1154_v44, %v1084_v41  ;;  %v2864_v48 = vpop.f32.mrb[15].mxu0 }
 0x5a2   :  { %v1158_v50 = vadd.f32 %v4206_v28, %v1155_v47  ;;  %v1228_v53 = vpop.f32.mrb[14].mxu1 }
 0x5a3   :  { %v1232_v54 = vadd.f32 %v1911_v49, %v1228_v53  ;;  %v2899_v56 = vpop.f32.mrb[15].mxu1  ;;  %v1914_v49 = vld [vmem:[%s4626_s6] ss:$0 sm:$0xff] }
 0x5a4   :  { %3836 = vtanh.f32 %v1158_v50 }
 0x5a5   :  { %3838 = vtanh.f32 %v1232_v54 }
 0x5ae   :  { %v3837_v57 = vpop.eup %3836 }
 0x5af   :  { %v3839_v59 = vpop.eup %3838  ;;  %2933 = vmatmul.mubr.f32.vlgmr.msra.gmra.mrb[16].mxu0 %v3837_v57 }
 0x5b0   :  { %2968 = vmatmul.mubr.f32.vlgmr.msra.gmra.mrb[16].mxu1 %v3839_v59  ;;  %3649 = vmatpush3.bf16.msra.mxu0 %v3905_v5 }
 0x5b1   :  { %3650 = vmatprep.subr.bf16.mxu0 %v3850_v0  ;;  %3002 = vmatprep.mubr.msk.f32.mxu0 %vm3851_vm0, %v3852_v4 }
 0x5b2   :  { %3673 = vmatpush3.bf16.msra.mxu1 %v3929_v12  ;;  %3037 = vmatprep.mubr.msk.f32.mxu1 %vm3851_vm0, %v3852_v4 }
 0x5b3   :  { %3674 = vmatprep.subr.bf16.mxu1 %v3850_v0 }
 0x5b4   :  { %3652 = vmatpush3.bf16.msra.mxu0 %v3914_v7 }
 0x5b5   :  { %3653 = vmatprep.subr.bf16.mxu0 %v3850_v0 }
 0x5b6   :  { %3676 = vmatpush3.bf16.msra.mxu1 %v3948_v18 }
 0x5b7   :  { %3677 = vmatprep.subr.bf16.mxu1 %v3850_v0 }
 0x5b8   :  { %3655 = vmatpush3.bf16.msra.mxu0 %v3938_v15 }
 0x5b9   :  { %3656 = vmatprep.subr.bf16.mxu0 %v3850_v0 }
 0x5ba   :  { %3679 = vmatpush3.bf16.msra.mxu1 %v3968_v24 }
 0x5bb   :  { %3680 = vmatprep.subr.bf16.mxu1 %v3850_v0 }
 0x5bc   :  { %3658 = vmatpush3.bf16.msra.mxu0 %v3958_v21 }
 0x5bd   :  { %3659 = vmatprep.subr.bf16.mxu0 %v3850_v0 }
 0x5be   :  { %3682 = vmatpush3.bf16.msra.mxu1 %v3988_v30 }
 0x5bf   :  { %3683 = vmatprep.subr.bf16.mxu1 %v3850_v0 }
 0x5c0   :  { %3661 = vmatpush3.bf16.msra.mxu0 %v3978_v27 }
 0x5c1   :  { %3662 = vmatprep.subr.bf16.mxu0 %v3850_v0 }
 0x5c2   :  { %3685 = vmatpush3.bf16.msra.mxu1 %v4008_v36 }
 0x5c3   :  { %3686 = vmatprep.subr.bf16.mxu1 %v3850_v0 }
 0x5c4   :  { %3664 = vmatpush3.bf16.msra.mxu0 %v3998_v33 }
 0x5c5   :  { %3665 = vmatprep.subr.bf16.mxu0 %v3850_v0 }
 0x5c6   :  { %3688 = vmatpush3.bf16.msra.mxu1 %v4028_v42 }
 0x5c7   :  { %3689 = vmatprep.subr.bf16.mxu1 %v3850_v0 }
 0x5c8   :  { %3667 = vmatpush3.bf16.msra.mxu0 %v4018_v39 }
 0x5c9   :  { %3668 = vmatprep.subr.bf16.mxu0 %v3850_v0 }
 0x5ca   :  { %3691 = vmatpush3.bf16.msra.mxu1 %v4042_v46 }
 0x5cb   :  { %3692 = vmatprep.subr.bf16.mxu1 %v3850_v0 }
 0x5cc   :  { %3670 = vmatpush3.bf16.msra.mxu0 %v4038_v45 }
 0x5cd   :  { %3695 = vmatprep.subr.bf16.mxu0 %v3850_v0 }
 0x5ce   :  { %3694 = vmatpush3.bf16.msra.mxu1 %v4061_v52 }
 0x5cf   :  { %3003 = vmatmul.mubr.f32.vlgmr.msra.gmra.mrb[18].mxu0 %v3839_v59  ;;  %3719 = vmatprep.subr.bf16.mxu1 %v3850_v0 }
 0x5d0   :  { %3697 = vmatpush3.bf16.msra.mxu0 %v4058_v51  ;;  %3072 = vmatprep.mubr.msk.f32.mxu0 %vm3851_vm0, %v3852_v4 }
 0x5d1   :  { %3698 = vmatprep.subr.bf16.mxu0 %v3850_v0 }
 0x5d4   :  { %3700 = vmatpush3.bf16.msra.mxu0 %v4073_v55 }
 0x5d5   :  { %3701 = vmatprep.subr.bf16.mxu0 %v3850_v0 }
 0x5d8   :  { %3703 = vmatpush3.bf16.msra.mxu0 %v4088_v58 }
 0x5d9   :  { %3704 = vmatprep.subr.bf16.mxu0 %v3850_v0 }
 0x5dc   :  { %3706 = vmatpush3.bf16.msra.mxu0 %v4102_v61 }
 0x5dd   :  { %3707 = vmatprep.subr.bf16.mxu0 %v3850_v0 }
 0x5e0   :  { %3709 = vmatpush3.bf16.msra.mxu0 %v4114_v1 }
 0x5e1   :  { %3710 = vmatprep.subr.bf16.mxu0 %v3850_v0 }
 0x5e4   :  { %3712 = vmatpush3.bf16.msra.mxu0 %v4137_v6 }
 0x5e5   :  { %3713 = vmatprep.subr.bf16.mxu0 %v3850_v0 }
 0x5e8   :  { %3715 = vmatpush3.bf16.msra.mxu0 %v4147_v10 }
 0x5e9   :  { %3716 = vmatprep.subr.bf16.mxu0 %v3850_v0 }
 0x5ec   :  { %3718 = vmatpush3.bf16.msra.mxu0 %v4156_v14 }
 0x5ed   :  { %3743 = vmatprep.subr.bf16.mxu0 %v3850_v0 }
 0x682   :  { %v1300_v60 = vpop.f32.mrb[16].mxu0 }
 0x683   :  { %v1370_v62 = vpop.f32.mrb[16].mxu1  ;;  %v2934_v63 = vpop.f32.mrb[17].mxu0 }
 0x684   :  { %v1371_v2 = vadd.f32 %v1370_v62, %v1300_v60  ;;  %v2969_v3 = vpop.f32.mrb[17].mxu1 }
 0x686   :  { %v1374_v8 = vadd.f32 %v4206_v28, %v1371_v2 }
 0x688   :  { %3840 = vtanh.f32 %v1374_v8 }
 0x692   :  { %v3841_v9 = vpop.eup %3840 }
 0x693   :  { %3038 = vmatmul.mubr.f32.vlgmr.msra.gmra.mrb[18].mxu1 %v3841_v9 }
 0x694   :  { %3721 = vmatpush3.bf16.msra.mxu1 %v3905_v5  ;;  %3107 = vmatprep.mubr.msk.f32.mxu1 %vm3851_vm0, %v3852_v4 }
 0x695   :  { %3722 = vmatprep.subr.bf16.mxu1 %v3850_v0 }
 0x698   :  { %3724 = vmatpush3.bf16.msra.mxu1 %v3914_v7 }
 0x699   :  { %3725 = vmatprep.subr.bf16.mxu1 %v3850_v0 }
 0x69c   :  { %3727 = vmatpush3.bf16.msra.mxu1 %v3938_v15 }
 0x69d   :  { %3728 = vmatprep.subr.bf16.mxu1 %v3850_v0 }
 0x6a0   :  { %3730 = vmatpush3.bf16.msra.mxu1 %v3958_v21 }
 0x6a1   :  { %3731 = vmatprep.subr.bf16.mxu1 %v3850_v0 }
 0x6a2   :  { %v1444_v5 = vpop.f32.mrb[18].mxu0 }
 0x6a3   :  { %v1448_v13 = vadd.f32 %v1912_v11, %v1444_v5  ;;  %v3004_v16 = vpop.f32.mrb[19].mxu0 }
 0x6a4   :  { %3733 = vmatpush3.bf16.msra.mxu1 %v3978_v27  ;;  %v1913_v27 = vld [vmem:[%s4623_s0 + $0x38] sm:$0xff] }
 0x6a5   :  { %3842 = vtanh.f32 %v1448_v13  ;;  %3734 = vmatprep.subr.bf16.mxu1 %v3850_v0 }
 0x6a8   :  { %3736 = vmatpush3.bf16.msra.mxu1 %v3998_v33 }
 0x6a9   :  { %3737 = vmatprep.subr.bf16.mxu1 %v3850_v0 }
 0x6ac   :  { %3739 = vmatpush3.bf16.msra.mxu1 %v4018_v39 }
 0x6ad   :  { %3740 = vmatprep.subr.bf16.mxu1 %v3850_v0 }
 0x6af   :  { %v3843_v7 = vpop.eup %3842 }
 0x6b0   :  { %3742 = vmatpush3.bf16.msra.mxu1 %v4038_v45  ;;  %3073 = vmatmul.mubr.f32.vlgmr.msra.gmra.mrb[20].mxu0 %v3843_v7  ;;  %v1809_v45 = vld [vmem:[%s4625_s5 + $0x8] sm:$0xff] }
 0x6b1   :  { %3767 = vmatprep.subr.bf16.mxu1 %v3850_v0  ;;  %3745 = vmatpush3.bf16.msra.mxu0 %v3929_v12 }
 0x6b2   :  { %3746 = vmatprep.subr.bf16.mxu0 %v3850_v0  ;;  %3142 = vmatprep.mubr.msk.f32.mxu0 %vm3851_vm0, %v3852_v4 }
 0x6b3   :  { %3108 = vmatmul.mubr.f32.vlgmr.msra.gmra.mrb[20].mxu1 %v3843_v7 }
 0x6b4   :  { %3769 = vmatpush3.bf16.msra.mxu1 %v4058_v51  ;;  %3177 = vmatprep.mubr.msk.f32.mxu1 %vm3851_vm0, %v3852_v4  ;;  %v1810_v51 = vld [vmem:[%s4625_s5 + $0x10] sm:$0xff] }
 0x6b5   :  { %3770 = vmatprep.subr.bf16.mxu1 %v3850_v0  ;;  %3748 = vmatpush3.bf16.msra.mxu0 %v3948_v18 }
 0x6b6   :  { %3749 = vmatprep.subr.bf16.mxu0 %v3850_v0 }
 0x6b8   :  { %3772 = vmatpush3.bf16.msra.mxu1 %v4073_v55 }
 0x6b9   :  { %3773 = vmatprep.subr.bf16.mxu1 %v3850_v0  ;;  %3751 = vmatpush3.bf16.msra.mxu0 %v3968_v24 }
 0x6ba   :  { %3752 = vmatprep.subr.bf16.mxu0 %v3850_v0 }
 0x6bc   :  { %3775 = vmatpush3.bf16.msra.mxu1 %v4088_v58 }
 0x6bd   :  { %3776 = vmatprep.subr.bf16.mxu1 %v3850_v0  ;;  %3754 = vmatpush3.bf16.msra.mxu0 %v3988_v30 }
 0x6be   :  { %3755 = vmatprep.subr.bf16.mxu0 %v3850_v0 }
 0x6c0   :  { %3778 = vmatpush3.bf16.msra.mxu1 %v4102_v61 }
 0x6c1   :  { %3779 = vmatprep.subr.bf16.mxu1 %v3850_v0  ;;  %3757 = vmatpush3.bf16.msra.mxu0 %v4008_v36 }
 0x6c2   :  { %3758 = vmatprep.subr.bf16.mxu0 %v3850_v0 }
 0x6c4   :  { %3781 = vmatpush3.bf16.msra.mxu1 %v4114_v1  ;;  %v1812_v1 = vld [vmem:[%s4625_s5 + $0x20] sm:$0xff] }
 0x6c5   :  { %3782 = vmatprep.subr.bf16.mxu1 %v3850_v0  ;;  %3760 = vmatpush3.bf16.msra.mxu0 %v4028_v42  ;;  %v1808_v42 = vld [vmem:[%s4625_s5] sm:$0xff] }
 0x6c6   :  { %3761 = vmatprep.subr.bf16.mxu0 %v3850_v0 }
 0x6c8   :  { %3784 = vmatpush3.bf16.msra.mxu1 %v4137_v6  ;;  %v1813_v6 = vld [vmem:[%s4625_s5 + $0x28] sm:$0xff] }
 0x6c9   :  { %3785 = vmatprep.subr.bf16.mxu1 %v3850_v0  ;;  %3763 = vmatpush3.bf16.msra.mxu0 %v4042_v46  ;;  %v3792_v46 = vpack.c.bf16 %v1809_v45, %v1808_v42 }
 0x6ca   :  { %3764 = vmatprep.subr.bf16.mxu0 %v3850_v0 }
 0x6cc   :  { %3787 = vmatpush3.bf16.msra.mxu1 %v4147_v10  ;;  %v3798_v10 = vpack.c.bf16 %v1813_v6, %v1812_v1 }
 0x6cd   :  { %3788 = vmatprep.subr.bf16.mxu1 %v3850_v0  ;;  %3766 = vmatpush3.bf16.msra.mxu0 %v4061_v52  ;;  %v1811_v52 = vld [vmem:[%s4625_s5 + $0x18] sm:$0xff] }
 0x6ce   :  { %3791 = vmatprep.subr.bf16.mxu0 %v3850_v0  ;;  %v3795_v61 = vpack.c.bf16 %v1811_v52, %v1810_v51 }
 0x6d0   :  { %3790 = vmatpush3.bf16.msra.mxu1 %v4156_v14  ;;  %v1814_v14 = vld [vmem:[%s4625_s5 + $0x30] sm:$0xff] }
 0x6d1   :  { %v3801_v19 = vpack.c.bf16 %v1815_v17, %v1814_v14 }
 0x766   :  { %v1516_v12 = vpop.f32.mrb[18].mxu1 }
 0x767   :  { %v3039_v15 = vpop.f32.mrb[19].mxu1 }
 0x783   :  { %v1586_v18 = vpop.f32.mrb[20].mxu0 }
 0x784   :  { %v1587_v21 = vadd.f32 %v1586_v18, %v1516_v12  ;;  %v3074_v24 = vpop.f32.mrb[21].mxu0 }
 0x786   :  { %v1590_v30 = vadd.f32 %v4206_v28, %v1587_v21  ;;  %v1660_v33 = vpop.f32.mrb[20].mxu1 }
 0x787   :  { %v1664_v36 = vadd.f32 %v1913_v27, %v1660_v33  ;;  %v3109_v39 = vpop.f32.mrb[21].mxu1 }
 0x788   :  { %3844 = vtanh.f32 %v1590_v30 }
 0x789   :  { %3846 = vtanh.f32 %v1664_v36 }
 0x792   :  { %v3845_v55 = vpop.eup %3844 }
 0x793   :  { %v3847_v58 = vpop.eup %3846  ;;  %3143 = vmatmul.mubr.f32.vlgmr.msra.gmra.mrb[22].mxu0 %v3845_v55 }
 0x794   :  { %3178 = vmatmul.mubr.f32.vlgmr.msra.gmra.mrb[22].mxu1 %v3847_v58  ;;  %3793 = vmatpush3.bf16.msra.mxu0 %v3792_v46 }
 0x795   :  { %3794 = vmatprep.subr.bf16.mxu0 %v3850_v0  ;;  %3212 = vmatprep.mubr.msk.f32.mxu0 %vm3851_vm0, %v3852_v4  ;;  %v1816_v4 = vld [vmem:[%s4625_s5 + $0x40] sm:$0xff] }
 0x796   :  { %v3804_v22 = vpack.c.bf16 %v1817_v20, %v1816_v4 }
 0x798   :  { %3796 = vmatpush3.bf16.msra.mxu0 %v3795_v61 }
 0x799   :  { %3797 = vmatprep.subr.bf16.mxu0 %v3850_v0 }
 0x79c   :  { %3799 = vmatpush3.bf16.msra.mxu0 %v3798_v10 }
 0x79d   :  { %3800 = vmatprep.subr.bf16.mxu0 %v3850_v0 }
 0x7a0   :  { %3802 = vmatpush3.bf16.msra.mxu0 %v3801_v19 }
 0x7a1   :  { %3803 = vmatprep.subr.bf16.mxu0 %v3850_v0 }
 0x7a4   :  { %3805 = vmatpush3.bf16.msra.mxu0 %v3804_v22 }
 0x7a5   :  { %3806 = vmatprep.subr.bf16.mxu0 %v3850_v0 }
 0x7a8   :  { %3808 = vmatpush3.bf16.msra.mxu0 %v3807_v26 }
 0x7a9   :  { %3809 = vmatprep.subr.bf16.mxu0 %v3850_v0 }
 0x7ac   :  { %3811 = vmatpush3.bf16.msra.mxu0 %v3810_v32 }
 0x7ad   :  { %3812 = vmatprep.subr.bf16.mxu0 %v3850_v0 }
 0x7b0   :  { %3814 = vmatpush3.bf16.msra.mxu0 %v3813_v37 }
 0x866   :  { %v1732_v38 = vpop.f32.mrb[22].mxu0 }
 0x867   :  { %v1802_v40 = vpop.f32.mrb[22].mxu1  ;;  %v3144_v41 = vpop.f32.mrb[23].mxu0 }
 0x868   :  { %v1803_v43 = vadd.f32 %v1802_v40, %v1732_v38  ;;  %v3179_v44 = vpop.f32.mrb[23].mxu1 }
 0x86a   :  { %v1806_v47 = vadd.f32 %v4206_v28, %v1803_v43 }
 0x86c   :  { %3848 = vtanh.f32 %v1806_v47 }
 0x876   :  { %v3849_v48 = vpop.eup %3848 }
 0x877   :  { %3213 = vmatmul.mubr.f32.vlgmr.msra.gmra.mrb[24].mxu0 %v3849_v48 }
 0x94a   :  { %v1897_v50 = vpop.f32.mrb[24].mxu0 }
 0x94b   :  { %v1898_v53 = vadd.f32 %v1914_v49, %v1897_v50  ;;  %v3214_v54 = vpop.f32.mrb[25].mxu0 }
 0x94d   :  { %1901 = vst [vmem:[%s4627_s7] sm:$0xff] %v1898_v53 }

</bundles_post_ra>
